<compile_context>
chip_gen: v7x
topology: tpu7x:2x2x1
jax: 0.10.0
libtpu: 0.0.40
codegen_flags: <defaults>
</compile_context>

<pallas_src>
import jax
import jax.numpy as jnp
from jax import lax
from jax.experimental import pallas as pl
from jax.experimental.pallas import tpu as pltpu


_VMEM_LIMIT = 48 * 1024 * 1024  # > default scoped limit on all gens, < v7x 64 MiB physical


def _round_up(x, m):
    return (x + m - 1) // m * m


def _pick_tile(size, base, cap):
    """Largest multiple of `base` that divides `size` and is <= cap (requires size % base == 0)."""
    best = base
    for cand in range(base, min(size, cap) + 1, base):
        if size % cand == 0:
            best = cand
    return best


# ---------------------------------------------------------------------------
# Generic dense kernel: out = x @ w + b.  bf16 MXU operands, f32 accumulation,
# tiled over rows (M) and output columns (N); both grid axes "parallel".
# ---------------------------------------------------------------------------
def _dense_kernel(x_ref, w_ref, b_ref, out_ref):
    acc = jnp.dot(x_ref[...], w_ref[...], preferred_element_type=jnp.float32)
    out_ref[...] = (acc + b_ref[...]).astype(out_ref.dtype)


def _dense(x, w, b, *, out_dtype=jnp.float32, tile_m_cap=256, tile_n_cap=512):
    """x: (M, K), w: (K, N), b: (1, N) -> (M, N) in out_dtype.  N must be a multiple of 128."""
    m, k = x.shape
    _, n = w.shape
    assert n % 128 == 0, "pad the output width to a multiple of 128 before calling _dense"

    m_pad = _round_up(m, 8)
    if m_pad != m:
        x = jnp.pad(x, ((0, m_pad - m), (0, 0)))
    tile_m = _pick_tile(m_pad, 8, tile_m_cap)
    tile_n = _pick_tile(n, 128, tile_n_cap)

    out = pl.pallas_call(
        _dense_kernel,
        out_shape=jax.ShapeDtypeStruct((m_pad, n), out_dtype),
        grid_spec=pltpu.PrefetchScalarGridSpec(
            num_scalar_prefetch=0,
            grid=(m_pad // tile_m, n // tile_n),
            in_specs=[
                pl.BlockSpec((tile_m, k), lambda i, j: (i, 0)),   # activation row tile (bf16)
                pl.BlockSpec((k, tile_n), lambda i, j: (0, j)),   # streamed weight column tile (bf16)
                pl.BlockSpec((1, tile_n), lambda i, j: (0, j)),   # bias column tile (f32)
            ],
            out_specs=pl.BlockSpec((tile_m, tile_n), lambda i, j: (i, j)),
        ),
        compiler_params=pltpu.CompilerParams(
            dimension_semantics=("parallel", "parallel"),
            vmem_limit_bytes=_VMEM_LIMIT,
        ),
    )(x.astype(jnp.bfloat16), w.astype(jnp.bfloat16), b.astype(jnp.float32))
    return out if m_pad == m else out[:m]


# ---------------------------------------------------------------------------
# Sequential LSTM core: only the recurrent part lives here.
# ---------------------------------------------------------------------------
def _sigmoid(x):
    # 0.5*(tanh(0.5x)+1): routes through the EUP tanh on all generations (v5e has no
    # cheap path for the exp+divide form of the logistic).
    return 0.5 * (jnp.tanh(0.5 * x) + 1.0)


def _lstm_recurrence_kernel(xproj_ref, wh_ref, h_seq_ref):
    """xproj already contains x@Wx + (b_ih + b_hh), stored bf16.

    xproj_ref: (TB, T, 4H) bf16   wh_ref: (H, 4H) bf16   h_seq_ref: (TB, T, H) f32
    """
    TB, T, _ = xproj_ref.shape
    H = wh_ref.shape[0]
    wh = wh_ref[...]                       # recurrent weight: loaded once, VMEM-resident

    def step(xp, h, c):
        # bf16 MXU operands, f32 gate accumulation; cell state stays f32.
        gates = xp.astype(jnp.float32) + jnp.dot(
            h.astype(jnp.bfloat16), wh, preferred_element_type=jnp.float32)
        # PyTorch LSTM gate order: i, f, g, o.  H is a multiple of 128 -> lane-aligned slices.
        i_g = _sigmoid(gates[:, 0 * H:1 * H])
        f_g = _sigmoid(gates[:, 1 * H:2 * H])
        g_g = jnp.tanh(gates[:, 2 * H:3 * H])
        o_g = _sigmoid(gates[:, 3 * H:4 * H])
        c_new = f_g * c + i_g * g_g
        h_new = o_g * jnp.tanh(c_new)
        return h_new, c_new

    h0 = jnp.zeros((TB, H), jnp.float32)
    c0 = jnp.zeros((TB, H), jnp.float32)

    if T <= 8:
        # Short sequences: fully static unroll (full scheduler visibility, static offsets).
        h, c = h0, c0
        for t in range(T):
            h, c = step(xproj_ref[:, t, :], h, c)
            h_seq_ref[:, t, :] = h
    else:
        # Long sequences: fori_loop bounds live ranges / code size against the 64-vreg
        # file; a small unroll keeps MXU/EUP slots overlapped without the blowup.
        def body(t, carry):
            h, c = carry
            h, c = step(xproj_ref[:, pl.ds(t, 1), :][:, 0, :], h, c)
            h_seq_ref[:, pl.ds(t, 1), :] = h[:, None, :]
            return (h, c)

        lax.fori_loop(0, T, body, (h0, c0), unroll=2)


# ---------------------------------------------------------------------------
# Forward pass (matches DecoderRNN.forward)
# ---------------------------------------------------------------------------
def decoder_rnn_forward(params, features, captions):
    """features: (B, E) float32, captions: (B, L) int32 -> logits (B, L, V) float32."""
    emb = params["embedding"]   # (V, E)
    wx = params["w_ih_t"]       # (E, 4H)
    wh = params["w_hh_t"]       # (H, 4H)
    b = params["b"]             # (1, 4H)  = b_ih + b_hh
    wo = params["w_out_t"]      # (H, V)
    bo = params["b_out"]        # (1, V)

    B, E = features.shape
    H = wh.shape[0]
    V = wo.shape[1]

    # ---- pad H and V to multiples of 128 (lane alignment).  Zero padding is exact:
    #      padded hidden units have i=f=o=0.5, g=0 -> c,h stay 0 and never leak. ----
    Hp = _round_up(H, 128)
    Vp = _round_up(V, 128)

    def pad_gate_cols(w):  # (*, 4H) -> (*, 4Hp), each gate block padded independently
        parts = [w[:, g * H:(g + 1) * H] for g in range(4)]
        parts = [jnp.pad(p, ((0, 0), (0, Hp - H))) for p in parts]
        return jnp.concatenate(parts, axis=-1)

    wx_p = pad_gate_cols(wx)                                       # (E, 4Hp)
    b_p = pad_gate_cols(b)                                         # (1, 4Hp)
    wh_p = jnp.pad(pad_gate_cols(wh), ((0, Hp - H), (0, 0)))       # (Hp, 4Hp)
    wo_p = jnp.pad(wo, ((0, Hp - H), (0, Vp - V)))                 # (Hp, Vp)
    bo_p = jnp.pad(bo, ((0, 0), (0, Vp - V)))                      # (1, Vp)

    # ---- glue (XLA): embedding gather + concat, batch-first.  T = caption_len. ----
    cap_emb = emb[captions[:, :-1]]                                       # (B, L-1, E)
    lstm_in = jnp.concatenate([features[:, None, :], cap_emb], axis=1)    # (B, T, E)
    lstm_in = lstm_in.astype(jnp.float32)
    T = lstm_in.shape[1]

    # ---- pad batch to a sublane-aligned tile for the recurrence ----
    Bp = _round_up(B, 8)
    tb = _pick_tile(Bp, 8, 64)
    if Bp != B:
        lstm_in = jnp.pad(lstm_in, ((0, Bp - B), (0, 0), (0, 0)))

    # (1) Hoisted input projection: one (Bp*T, E) @ (E, 4Hp) MXU matmul; bf16 output.
    xproj = _dense(lstm_in.reshape(Bp * T, E), wx_p, b_p,
                   out_dtype=jnp.bfloat16).reshape(Bp, T, 4 * Hp)

    # (2) Sequential LSTM recurrence: batch-tiled "parallel" grid (v7x megacore can
    #     split batch rows across its two TensorCores); wh replicated per tile.
    h_seq = pl.pallas_call(
        _lstm_recurrence_kernel,
        out_shape=jax.ShapeDtypeStruct((Bp, T, Hp), jnp.float32),
        grid_spec=pltpu.PrefetchScalarGridSpec(
            num_scalar_prefetch=0,
            grid=(Bp // tb,),
            in_specs=[
                pl.BlockSpec((tb, T, 4 * Hp), lambda i: (i, 0, 0)),   # xproj batch tile (bf16)
                pl.BlockSpec((Hp, 4 * Hp), lambda i: (0, 0)),         # wh replicated (bf16)
            ],
            out_specs=pl.BlockSpec((tb, T, Hp), lambda i: (i, 0, 0)),
        ),
        compiler_params=pltpu.CompilerParams(
            dimension_semantics=("parallel",),
            vmem_limit_bytes=_VMEM_LIMIT,
        ),
    )(xproj, wh_p.astype(jnp.bfloat16))

    # (3) Hoisted vocab projection, tiled over rows and V.  Rows stay batch-major,
    #     so the reshape IS the final (B, T, V) layout -- no transpose.
    h2d = h_seq[:B].reshape(B * T, Hp)
    logits = _dense(h2d, wo_p, bo_p, out_dtype=jnp.float32).reshape(B, T, Vp)
    return logits[:, :, :V]

    # TODO(synk): DecoderRNN.sample() (greedy decode with a Python break) is host-side
    # control flow and is not implemented as a Pallas kernel.


# ---------------------------------------------------------------------------
# Pure-JAX f32 reference (mirrors nn.LSTM semantics, gate order i, f, g, o)
# ---------------------------------------------------------------------------
def _reference_forward(params, features, captions):
    emb = params["embedding"]
    wx, wh, b = params["w_ih_t"], params["w_hh_t"], params["b"]
    wo, bo = params["w_out_t"], params["b_out"]
    B, E = features.shape
    H = wh.shape[0]

    cap_emb = emb[captions[:, :-1]]
    lstm_in = jnp.concatenate([features[:, None, :], cap_emb], axis=1)
    x_tbe = jnp.transpose(lstm_in, (1, 0, 2)).astype(jnp.float32)

    def step(carry, x):
        h, c = carry
        gates = x @ wx + h @ wh + b
        i = jax.nn.sigmoid(gates[:, 0 * H:1 * H])
        f = jax.nn.sigmoid(gates[:, 1 * H:2 * H])
        g = jnp.tanh(gates[:, 2 * H:3 * H])
        o = jax.nn.sigmoid(gates[:, 3 * H:4 * H])
        c = f * c + i * g
        h = o * jnp.tanh(c)
        return (h, c), h @ wo + bo

    init = (jnp.zeros((B, H), jnp.float32), jnp.zeros((B, H), jnp.float32))
    _, out = lax.scan(step, init, x_tbe)
    return jnp.transpose(out, (1, 0, 2))


def init_params(key, embed_size, hidden_size, vocab_size):
    ks = jax.random.split(key, 6)
    s = 0.1
    return {
        "embedding": s * jax.random.normal(ks[0], (vocab_size, embed_size), jnp.float32),
        # stored pre-transposed for row-major matmuls in the kernels
        "w_ih_t": s * jax.random.normal(ks[1], (embed_size, 4 * hidden_size), jnp.float32),
        "w_hh_t": s * jax.random.normal(ks[2], (hidden_size, 4 * hidden_size), jnp.float32),
        # b = b_ih + b_hh (PyTorch keeps them separate; the sum is equivalent)
        "b": s * jax.random.normal(ks[3], (1, 4 * hidden_size), jnp.float32),
        "w_out_t": s * jax.random.normal(ks[4], (hidden_size, vocab_size), jnp.float32),
        "b_out": s * jax.random.normal(ks[5], (1, vocab_size), jnp.float32),
    }


if __name__ == "__main__":
    embed_size, hidden_size, vocab_size = 32, 32, 100   # H, V deliberately non-128-aligned
    batch, caption_len = 2, 8                           # -> LSTM sequence length T = 8

    key = jax.random.PRNGKey(0)
    kp, kf, kc = jax.random.split(key, 3)
    params = init_params(kp, embed_size, hidden_size, vocab_size)
    features = jax.random.normal(kf, (batch, embed_size), jnp.float32)
    captions = jax.random.randint(kc, (batch, caption_len), 0, vocab_size, jnp.int32)

    out = decoder_rnn_forward(params, features, captions)
    out = jax.block_until_ready(out)

    ref = _reference_forward(params, features, captions)
    assert out.shape == (batch, caption_len, vocab_size)
    # bf16 MXU operands (f32 accumulation) -> compare against the f32 reference at
    # bf16-appropriate tolerance.
    assert jnp.allclose(out, ref, atol=2e-2, rtol=2e-2), float(jnp.max(jnp.abs(out - ref)))
    print("KERNEL_OK")
</pallas_src>

<mosaic_0001>
module attributes {stable_mosaic.version = 11 : i64} {
  func.func @_dense_kernel(%arg0: i32, %arg1: i32, %arg2: memref<64x32xbf16, #tpu.memory_space<vmem>>, %arg3: memref<32x512xbf16, #tpu.memory_space<vmem>>, %arg4: memref<1x512xf32, #tpu.memory_space<vmem>>, %arg5: memref<64x512xbf16, #tpu.memory_space<vmem>>) attributes {dimension_semantics = [#tpu.dimension_semantics<parallel>, #tpu.dimension_semantics<parallel>], iteration_bounds = array<i64: 1, 1>, scalar_prefetch = 0 : i64, scratch_operands = 0 : i64, tpu.core_type = #tpu.core_type<tc>, window_params = [{transform_indices = @transform_0, window_bounds = array<i64: 64, 32>}, {transform_indices = @transform_1, window_bounds = array<i64: 32, 512>}, {transform_indices = @transform_2, window_bounds = array<i64: 1, 512>}, {transform_indices = @transform_3, window_bounds = array<i64: 64, 512>}]} {
    %c0 = arith.constant 0 : index
    %c0_0 = arith.constant 0 : index
    %0 = vector.load %arg2[%c0, %c0_0] : memref<64x32xbf16, #tpu.memory_space<vmem>>, vector<64x32xbf16>
    %c0_1 = arith.constant 0 : index
    %c0_2 = arith.constant 0 : index
    %1 = vector.load %arg3[%c0_1, %c0_2] : memref<32x512xbf16, #tpu.memory_space<vmem>>, vector<32x512xbf16>
    %cst = arith.constant dense<0.000000e+00> : vector<64x512xf32>
    %2 = tpu.matmul %0, %1, %cst {dimension_numbers = #tpu.dot_dimension_numbers<[1], [0], [0], [1], [0, 0, 1, 1], [], []>} : vector<64x32xbf16>, vector<32x512xbf16>, vector<64x512xf32> -> vector<64x512xf32>
    %c0_3 = arith.constant 0 : index
    %c0_4 = arith.constant 0 : index
    %3 = vector.load %arg4[%c0_3, %c0_4] : memref<1x512xf32, #tpu.memory_space<vmem>>, vector<1x512xf32>
    %4 = vector.broadcast %3 : vector<1x512xf32> to vector<64x512xf32>
    %5 = arith.addf %2, %4 : vector<64x512xf32>
    %6 = arith.truncf %5 : vector<64x512xf32> to vector<64x512xbf16>
    %c0_5 = arith.constant 0 : index
    %c0_6 = arith.constant 0 : index
    %7 = vector.load %arg5[%c0_5, %c0_6] : memref<64x512xbf16, #tpu.memory_space<vmem>>, vector<64x512xbf16>
    tpu.vector_store %arg5[%c0_5, %c0_6], %6 {strides = array<i32>} : memref<64x512xbf16, #tpu.memory_space<vmem>>, vector<64x512xbf16>,
    return
  }
  func.func @transform_0(%arg0: i32, %arg1: i32) -> (i32, i32) {
    %c0_i32 = arith.constant 0 : i32
    %c0_i32_0 = arith.constant 0 : i32
    return %arg0, %c0_i32 : i32, i32
  }
  func.func @transform_1(%arg0: i32, %arg1: i32) -> (i32, i32) {
    %c0_i32 = arith.constant 0 : i32
    %c0_i32_0 = arith.constant 0 : i32
    return %c0_i32, %arg1 : i32, i32
  }
  func.func @transform_2(%arg0: i32, %arg1: i32) -> (i32, i32) {
    %c0_i32 = arith.constant 0 : i32
    %c0_i32_0 = arith.constant 0 : i32
    return %c0_i32, %arg1 : i32, i32
  }
  func.func @transform_3(%arg0: i32, %arg1: i32) -> (i32, i32) {
    %c0_i32 = arith.constant 0 : i32
    return %arg0, %arg1 : i32, i32
  }
}

</mosaic_0001>

<bundles_post_ra>
// kernel: tpu_custom_call.1
= control target key start
LH: loop header
LB: loop body
LE: loop exit
PB: predicated region body
PF: predicated region fallthrough
CT: control target
= control target key end

     0   :  { %8 = vsyncpa [#allocation3], 0  ;;  %s655_s0 = inlined_call_operand.vmem [shape: bf16[64,32], index: 0, kind: input, shape index: {}]   ;;  %s656_s1 = inlined_call_operand.hbm [shape: bf16[32,512], index: 1, kind: input, shape index: {}]   ;;  %s657_s2 = inlined_call_operand.vmem [shape: f32[1,512], index: 2, kind: input, shape index: {}]   ;;  %s658_s3 = inlined_call_operand.hbm [shape: bf16[64,512], index: 3, kind: output, shape index: {}]  }
   0x1   :  { %9 = vsyncpa [#allocation4], 0  ;;  %s537_s12 = smov [#allocation2]   ;;  %s489_s16 = scalar_lea.hbm %s656_s1, 1024 }
   0x2   :  { %s17_s13 = sshll.u32 %s537_s12, 4  ;;  %p490_p0 = scmp.ne.s32.totalorder %s656_s1, %s489_s16  ;;  %s18_s13 = int_to_ptr.vmem [resolvable:$true] %s17_s13 }
   0x3   :  { %p493_p1 = scmp.lt.u32.totalorder %s489_s16, %s656_s1 }
   0x5   :  { %p495_p2 = pnand %p493_p1, %p490_p0 }
   0x7   :  { %498 = shalt.err (!%p495_p2)
}
   0x8   :  { %s499_s21 = scalar_lea.vmem %s18_s13, 1024  ;;  %p504_p4 = scmp.lt.s32.totalorder %s18_s13, %s18_s13 }
   0x9   :  { %p500_p3 = scmp.ne.s32.totalorder %s18_s13, %s499_s21  ;;  %p505_p5 = scmp.lt.s32.totalorder %s499_s21, %s499_s21 }
   0xb   :  { %p506_p6 = por %p505_p5, %p504_p4 }
   0xd   :  { %p507_p7 = pnand %p506_p6, %p500_p3 }
   0xf   :  { %510 = shalt.err (!%p507_p7)
}
  0x10   :  { %s538_s22 = smov 256   ;;  %s539_s23 = smov 16  }
  0x11   :  { %23 = dma.hbm_to_vmem [thread:$0]  %s656_s1, 1024, %s18_s13, [#allocation3], %s538_s22, %s538_s22, %s539_s23  }
  0x12   :  { %533 = dma.done.wait [#allocation3], 1024  }
  0x13   :  { %534 = vsyncadd [#allocation3], 4294966272  ;;  %v540_v0 = vmov 0   ;;  %v473_v1 = vld [vmem:[#allocation2 + $0x4] ss:$16 sps:$4 sm:$0xff]   ;;  %vm128_vm0 = vcmask 261120   ;;  %v48_v13 = vlaneseq }
  0x14   :  { %173 = vmatprep.mubr.bf16.mxu0 %v540_v0  ;;  %246 = vmatprep.mubr.bf16.mxu1 %v540_v0  ;;  %v475_v2 = vld [vmem:[#allocation2 + $0xc] ss:$16 sps:$4 sm:$0xff]   ;;  %v477_v3 = vld [vmem:[#allocation2] ss:$16 sps:$4 sm:$0xff]   ;;  %v478_v4 = vld [vmem:[#allocation2 + $0x8] ss:$16 sps:$4 sm:$0xff]  }
  0x15   :  { %141 = vmatprep.subr.bf16.mxu0 %v473_v1  ;;  %214 = vmatprep.subr.bf16.mxu1 %v475_v2  ;;  %v479_v5 = vld [vmem:[#allocation2 + $0x24] ss:$16 sps:$4 sm:$0xff]   ;;  %v481_v6 = vld [vmem:[#allocation2 + $0x2c] ss:$16 sps:$4 sm:$0xff]   ;;  %v483_v7 = vld [vmem:[#allocation2 + $0x20] ss:$16 sps:$4 sm:$0xff]  }
  0x16   :  { %142 = vmatpush1.bf16.msra.mxu0 %v477_v3  ;;  %215 = vmatpush1.bf16.msra.mxu1 %v478_v4  ;;  %v484_v8 = vld [vmem:[#allocation2 + $0x28] ss:$16 sps:$4 sm:$0xff]   ;;  %v485_v9 = vld [vmem:[%s655_s0] sm:$0xff]   ;;  %v487_v11 = vld [vmem:[%s655_s0 + $0x10] sm:$0xff]   ;;  %v49_v14 = vshrl.u32 %v48_v13, 7 }
  0x17   :  { %143 = vmatprep.subr.bf16.mxu0 %v479_v5  ;;  %216 = vmatprep.subr.bf16.mxu1 %v481_v6  ;;  %v486_v10 = vld [vmem:[%s655_s0 + $0x8] sm:$0xff]   ;;  %v488_v12 = vld [vmem:[%s655_s0 + $0x18] sm:$0xff]   ;;  %v46_v17 = vld [vmem:[%s657_s2] sm:$0xf]  ;;  %s541_s0 = smov [#allocation5]  }
  0x18   :  { %v50_v15 = vsub.s32 0, %v49_v14  ;;  %v58_v16 = vsub.s32 2, %v49_v14  ;;  %v54_v18 = vsub.s32 1, %v49_v14  ;;  %v62_v19 = vsub.s32 3, %v49_v14  ;;  %s404_s2 = sshll.u32 %s541_s0, 4  ;;  %s405_s2 = int_to_ptr.vmem [resolvable:$true] %s404_s2 }
  0x19   :  { %s511_s8 = scalar_lea.vmem %s405_s2, 2048  ;;  %p516_p9 = scmp.lt.s32.totalorder %s405_s2, %s405_s2 }
  0x1a   :  { %144 = vmatpush1.bf16.msra.mxu0 %v483_v7  ;;  %217 = vmatpush1.bf16.msra.mxu1 %v484_v8  ;;  %v600_v20 = vrot.slane %v46_v17, %v50_v15  ;;  %v602_v21 = vrot.slane %v46_v17, %v58_v16  ;;  %v604_v22 = vrot.slane %v46_v17, %v54_v18  ;;  %p512_p8 = scmp.ne.s32.totalorder %s405_s2, %s511_s8  ;;  %p517_p10 = scmp.lt.s32.totalorder %s511_s8, %s511_s8 }
  0x1b   :  { %v606_v23 = vrot.slane %v46_v17, %v62_v19 }
  0x1c   :  { %p518_p11 = por %p517_p10, %p516_p9 }
  0x1d   :  { %428 = vmatmul.mubr.msk.bf16.vlgmr.msra.gmra.mrb[0].mxu0 %vm128_vm0, %v485_v9  ;;  %432 = vmatmul.mubr.msk.bf16.vlgmr.msra.gmra.mrb[0].mxu1 %vm128_vm0, %v485_v9 }
  0x1e   :  { %183 = vmatprep.mubr.bf16.mxu0 %v540_v0  ;;  %256 = vmatprep.mubr.bf16.mxu1 %v540_v0  ;;  %p519_p12 = pnand %p518_p11, %p512_p8 }
  0x25   :  { %429 = vmatmul.mubr.msk.bf16.gmra.mrb[4].mxu0 %vm128_vm0, %v486_v10  ;;  %433 = vmatmul.mubr.msk.bf16.gmra.mrb[4].mxu1 %vm128_vm0, %v486_v10 }
  0x26   :  { %193 = vmatprep.mubr.bf16.mxu0 %v540_v0  ;;  %266 = vmatprep.mubr.bf16.mxu1 %v540_v0 }
  0x2d   :  { %430 = vmatmul.mubr.msk.bf16.gmra.mrb[8].mxu0 %vm128_vm0, %v487_v11  ;;  %434 = vmatmul.mubr.msk.bf16.gmra.mrb[8].mxu1 %vm128_vm0, %v487_v11 }
  0x2e   :  { %203 = vmatprep.mubr.bf16.mxu0 %v540_v0  ;;  %276 = vmatprep.mubr.bf16.mxu1 %v540_v0 }
  0x35   :  { %431 = vmatmul.mubr.msk.bf16.gmra.mrb[12].mxu0 %vm128_vm0, %v488_v12  ;;  %435 = vmatmul.mubr.msk.bf16.gmra.mrb[12].mxu1 %vm128_vm0, %v488_v12 }
  0xf0   :  { %v175_v24 = vpop.f32.mrb[0].mxu0  ;;  %v248_v25 = vpop.f32.mrb[0].mxu1 }
  0xf1   :  { %v176_v26 = vadd.f32 %v175_v24, %v600_v20  ;;  %v249_v27 = vadd.f32 %v248_v25, %v602_v21  ;;  %v177_v28 = vpop.f32.mrb[1].mxu0  ;;  %v250_v29 = vpop.f32.mrb[1].mxu1 }
  0xf2   :  { %v178_v30 = vadd.f32 %v177_v28, %v604_v22  ;;  %v251_v31 = vadd.f32 %v250_v29, %v606_v23  ;;  %v179_v32 = vpop.f32.mrb[2].mxu0  ;;  %v252_v33 = vpop.f32.mrb[2].mxu1 }
  0xf3   :  { %v180_v34 = vadd.f32 %v179_v32, %v600_v20  ;;  %v253_v35 = vadd.f32 %v252_v33, %v602_v21  ;;  %v181_v36 = vpop.f32.mrb[3].mxu0  ;;  %v254_v37 = vpop.f32.mrb[3].mxu1 }
  0xf4   :  { %v452_v38 = vpack.c.bf16 %v178_v30, %v176_v26  ;;  %v453_v39 = vpack.c.bf16 %v251_v31, %v249_v27  ;;  %v182_v40 = vadd.f32 %v181_v36, %v604_v22  ;;  %v255_v41 = vadd.f32 %v254_v37, %v606_v23 }
  0xf6   :  { %383 = vst [vmem:[#allocation5] sm:$0xff] %v452_v38  ;;  %384 = vst [vmem:[#allocation5 + $0x8] sm:$0xff] %v453_v39  ;;  %v454_v42 = vpack.c.bf16 %v182_v40, %v180_v34  ;;  %v455_v43 = vpack.c.bf16 %v255_v41, %v253_v35 }
  0xf8   :  { %385 = vst [vmem:[#allocation5 + $0x10] sm:$0xff] %v454_v42  ;;  %386 = vst [vmem:[#allocation5 + $0x18] sm:$0xff] %v455_v43  ;;  %v185_v44 = vpop.f32.mrb[4].mxu0  ;;  %v258_v45 = vpop.f32.mrb[4].mxu1 }
  0xf9   :  { %v186_v46 = vadd.f32 %v185_v44, %v600_v20  ;;  %v259_v47 = vadd.f32 %v258_v45, %v602_v21  ;;  %v187_v48 = vpop.f32.mrb[5].mxu0  ;;  %v260_v49 = vpop.f32.mrb[5].mxu1 }
  0xfa   :  { %v188_v50 = vadd.f32 %v187_v48, %v604_v22  ;;  %v261_v51 = vadd.f32 %v260_v49, %v606_v23  ;;  %v189_v52 = vpop.f32.mrb[6].mxu0  ;;  %v262_v53 = vpop.f32.mrb[6].mxu1 }
  0xfb   :  { %v190_v54 = vadd.f32 %v189_v52, %v600_v20  ;;  %v263_v55 = vadd.f32 %v262_v53, %v602_v21  ;;  %v191_v56 = vpop.f32.mrb[7].mxu0  ;;  %v264_v57 = vpop.f32.mrb[7].mxu1 }
  0xfc   :  { %v456_v58 = vpack.c.bf16 %v188_v50, %v186_v46  ;;  %v457_v59 = vpack.c.bf16 %v261_v51, %v259_v47  ;;  %v192_v60 = vadd.f32 %v191_v56, %v604_v22  ;;  %v265_v61 = vadd.f32 %v264_v57, %v606_v23 }
  0xfe   :  { %387 = vst [vmem:[#allocation5 + $0x20] sm:$0xff] %v456_v58  ;;  %388 = vst [vmem:[#allocation5 + $0x28] sm:$0xff] %v457_v59  ;;  %v458_v62 = vpack.c.bf16 %v192_v60, %v190_v54  ;;  %v459_v63 = vpack.c.bf16 %v265_v61, %v263_v55 }
 0x100   :  { %389 = vst [vmem:[#allocation5 + $0x30] sm:$0xff] %v458_v62  ;;  %390 = vst [vmem:[#allocation5 + $0x38] sm:$0xff] %v459_v63  ;;  %v195_v0 = vpop.f32.mrb[8].mxu0  ;;  %v268_v1 = vpop.f32.mrb[8].mxu1 }
 0x101   :  { %v196_v2 = vadd.f32 %v195_v0, %v600_v20  ;;  %v269_v3 = vadd.f32 %v268_v1, %v602_v21  ;;  %v197_v4 = vpop.f32.mrb[9].mxu0  ;;  %v270_v5 = vpop.f32.mrb[9].mxu1 }
 0x102   :  { %v198_v6 = vadd.f32 %v197_v4, %v604_v22  ;;  %v271_v7 = vadd.f32 %v270_v5, %v606_v23  ;;  %v199_v8 = vpop.f32.mrb[10].mxu0  ;;  %v272_v9 = vpop.f32.mrb[10].mxu1 }
 0x103   :  { %v200_v10 = vadd.f32 %v199_v8, %v600_v20  ;;  %v273_v11 = vadd.f32 %v272_v9, %v602_v21  ;;  %v201_v12 = vpop.f32.mrb[11].mxu0  ;;  %v274_v13 = vpop.f32.mrb[11].mxu1 }
 0x104   :  { %v460_v14 = vpack.c.bf16 %v198_v6, %v196_v2  ;;  %v461_v15 = vpack.c.bf16 %v271_v7, %v269_v3  ;;  %v202_v16 = vadd.f32 %v201_v12, %v604_v22  ;;  %v275_v17 = vadd.f32 %v274_v13, %v606_v23 }
 0x106   :  { %391 = vst [vmem:[#allocation5 + $0x40] sm:$0xff] %v460_v14  ;;  %392 = vst [vmem:[#allocation5 + $0x48] sm:$0xff] %v461_v15  ;;  %v462_v18 = vpack.c.bf16 %v202_v16, %v200_v10  ;;  %v463_v19 = vpack.c.bf16 %v275_v17, %v273_v11 }
 0x108   :  { %393 = vst [vmem:[#allocation5 + $0x50] sm:$0xff] %v462_v18  ;;  %394 = vst [vmem:[#allocation5 + $0x58] sm:$0xff] %v463_v19  ;;  %v205_v24 = vpop.f32.mrb[12].mxu0  ;;  %v278_v25 = vpop.f32.mrb[12].mxu1 }
 0x109   :  { %v206_v26 = vadd.f32 %v205_v24, %v600_v20  ;;  %v279_v27 = vadd.f32 %v278_v25, %v602_v21  ;;  %v207_v28 = vpop.f32.mrb[13].mxu0  ;;  %v280_v29 = vpop.f32.mrb[13].mxu1 }
 0x10a   :  { %v208_v30 = vadd.f32 %v207_v28, %v604_v22  ;;  %v281_v31 = vadd.f32 %v280_v29, %v606_v23  ;;  %v209_v32 = vpop.f32.mrb[14].mxu0  ;;  %v282_v33 = vpop.f32.mrb[14].mxu1 }
 0x10b   :  { %v210_v34 = vadd.f32 %v209_v32, %v600_v20  ;;  %v283_v35 = vadd.f32 %v282_v33, %v602_v21  ;;  %v211_v36 = vpop.f32.mrb[15].mxu0  ;;  %v284_v37 = vpop.f32.mrb[15].mxu1 }
 0x10c   :  { %v464_v38 = vpack.c.bf16 %v208_v30, %v206_v26  ;;  %v465_v39 = vpack.c.bf16 %v281_v31, %v279_v27  ;;  %v212_v40 = vadd.f32 %v211_v36, %v604_v22  ;;  %v285_v41 = vadd.f32 %v284_v37, %v606_v23 }
 0x10e   :  { %395 = vst [vmem:[#allocation5 + $0x60] sm:$0xff] %v464_v38  ;;  %396 = vst [vmem:[#allocation5 + $0x68] sm:$0xff] %v465_v39  ;;  %v466_v42 = vpack.c.bf16 %v212_v40, %v210_v34  ;;  %v467_v43 = vpack.c.bf16 %v285_v41, %v283_v35 }
 0x110   :  { %397 = vst [vmem:[#allocation5 + $0x70] sm:$0xff] %v466_v42  ;;  %398 = vst [vmem:[#allocation5 + $0x78] sm:$0xff] %v467_v43 }
 0x111   :  { %522 = shalt.err (!%p519_p12)
}
 0x112   :  { %s523_s11 = scalar_lea.hbm %s658_s3, 2048 }
 0x113   :  { %p524_p13 = scmp.ne.s32.totalorder %s658_s3, %s523_s11  ;;  %p527_p0 = scmp.lt.u32.totalorder %s523_s11, %s658_s3 }
 0x115   :  { %p529_p1 = pnand %p527_p0, %p524_p13 }
 0x117   :  { %532 = shalt.err (!%p529_p1)
}
 0x118   :  { %410 = dma.vmem_to_hbm [thread:$0]  %s405_s2, 2048, %s658_s3, [#allocation4], %s538_s22, %s538_s22, %s539_s23  }
 0x119   :  { %535 = dma.done.wait [#allocation4], 2048  }
 0x11a   :  { %536 = vsyncadd [#allocation4], 4294965248 }
 0x11b   :  { %414 = vsyncpa [#allocation3], 1 }
 0x11c   :  { %415 = vsyncpa [#allocation4], 1 }

</bundles_post_ra>
